<compile_context>
chip_gen: v5e
topology: v5e:2x2
jax: 0.10.0
libtpu: 0.0.40
codegen_flags: <defaults>
</compile_context>

<pallas_src>
import functools

import jax
import jax.numpy as jnp
from jax.experimental import pallas as pl
from jax.experimental.pallas import tpu as pltpu

_LN_EPS = 1e-5          # nn.LayerNorm default
_LEAKY_SLOPE = 0.2      # nn.LeakyReLU(0.2)


def _layer_norm(h, gamma, beta):
    # One-pass variance: E[h^2] - mu^2 (clamped against tiny negative cancellation).
    mu = jnp.mean(h, axis=-1, keepdims=True)
    ms = jnp.mean(h * h, axis=-1, keepdims=True)
    var = jnp.maximum(ms - mu * mu, 0.0)
    return (h - mu) * jax.lax.rsqrt(var + _LN_EPS) * gamma + beta


def _residual_block_kernel(x_ref, w1_ref, w2_ref, vec_ref, o_ref):
    # x_ref: (TM, F) row tile.  w*_ref: (F, F) resident weights.
    # vec_ref: (6, F) stacked [b1, gamma1, beta1, b2, gamma2, beta2].
    x32 = x_ref[...].astype(jnp.float32)

    b1, g1, be1 = vec_ref[0:1, :], vec_ref[1:2, :], vec_ref[2:3, :]
    b2, g2, be2 = vec_ref[3:4, :], vec_ref[4:5, :], vec_ref[5:6, :]

    # Linear(F->F) + LayerNorm + LeakyReLU(0.2)  — bf16 MXU operands, f32 accum.
    h = jnp.dot(x32.astype(jnp.bfloat16), w1_ref[...].astype(jnp.bfloat16),
                preferred_element_type=jnp.float32) + b1
    h = _layer_norm(h, g1, be1)
    h = jnp.maximum(h, _LEAKY_SLOPE * h)

    # Linear(F->F) + LayerNorm
    h = jnp.dot(h.astype(jnp.bfloat16), w2_ref[...].astype(jnp.bfloat16),
                preferred_element_type=jnp.float32) + b2
    h = _layer_norm(h, g2, be2)

    # Residual add + final LeakyReLU(0.2)
    out = h + x32
    out = jnp.maximum(out, _LEAKY_SLOPE * out)
    o_ref[...] = out.astype(o_ref.dtype)


def _round_up(n, m):
    return ((n + m - 1) // m) * m


@functools.partial(jax.jit, static_argnames=("tm",))
def residual_block(x, params, *, tm=4096):
    """x: (..., F) float32 (or bf16).  params: dict of kernel weights."""
    orig_shape = x.shape
    F = orig_shape[-1]
    x2d = x.reshape(-1, F)
    N = x2d.shape[0]

    # Row tile: multiple of the sublane pack (8 for f32, 16 for bf16); capped at
    # ~half the rows so the grid has >= 2 'parallel' blocks for large N (keeps
    # both v7x TensorCores busy).  No host-side padding: pl.cdiv grid, Pallas
    # masks the ragged last block's writes.
    sub = 8 if x.dtype == jnp.float32 else 16
    tm_cap = max(sub, _round_up(-(-N // 2), sub))
    tm_eff = max(sub, (min(tm, tm_cap) // sub) * sub)
    grid_len = pl.cdiv(N, tm_eff)

    # VMEM budget: double-buffered x/out tiles + ~4 tile-sized f32 temporaries
    # (upcast x, h, LN intermediates) + (possibly double-buffered) weights.
    # 16 MiB floor, 48 MiB cap -> safe headroom on v7x (64 MiB physical VMEM).
    tile_bytes = tm_eff * F * 4
    weight_bytes = 2 * F * F * 4
    footprint = 8 * tile_bytes + 2 * weight_bytes
    vmem_limit = int(min(48 << 20, max(16 << 20, int(footprint * 1.5))))

    # Stack the six (1, F) vectors into one (6, F) block: single DMA, less
    # sublane-padding waste than six separate (1, F) inputs.
    vecs = jnp.concatenate(
        [params["b1"], params["gamma1"], params["beta1"],
         params["b2"], params["gamma2"], params["beta2"]], axis=0)

    out2d = pl.pallas_call(
        _residual_block_kernel,
        out_shape=jax.ShapeDtypeStruct((N, F), x.dtype),
        grid_spec=pltpu.PrefetchScalarGridSpec(
            num_scalar_prefetch=0,
            grid=(grid_len,),
            in_specs=[
                pl.BlockSpec((tm_eff, F), lambda i: (i, 0)),   # x rows
                pl.BlockSpec((F, F), lambda i: (0, 0)),        # W1 (in, out)
                pl.BlockSpec((F, F), lambda i: (0, 0)),        # W2 (in, out)
                pl.BlockSpec((6, F), lambda i: (0, 0)),        # stacked bias/LN vectors
            ],
            out_specs=pl.BlockSpec((tm_eff, F), lambda i: (i, 0)),
        ),
        compiler_params=pltpu.CompilerParams(
            dimension_semantics=("parallel",),
            vmem_limit_bytes=vmem_limit),
    )(x2d, params["w1"], params["w2"], vecs)

    return out2d.reshape(orig_shape)


def init_params(key, in_features):
    """Deterministic synthetic parameters matching ResidualBlock(in_features)."""
    F = in_features
    k1, k2, k3, k4 = jax.random.split(key, 4)
    # (in_features, out_features) layout == PyTorch W.T
    w1 = jax.random.normal(k1, (F, F), jnp.float32) * 0.05
    b1 = jax.random.normal(k2, (1, F), jnp.float32) * 0.05
    w2 = jax.random.normal(k3, (F, F), jnp.float32) * 0.05
    b2 = jax.random.normal(k4, (1, F), jnp.float32) * 0.05
    return dict(w1=w1, b1=b1,
                gamma1=jnp.ones((1, F), jnp.float32), beta1=jnp.zeros((1, F), jnp.float32),
                w2=w2, b2=b2,
                gamma2=jnp.ones((1, F), jnp.float32), beta2=jnp.zeros((1, F), jnp.float32))


def _reference(x, p):
    """Pure-JAX f32 reference of the PyTorch forward (for sanity check)."""
    def ln(h, g, b):
        mu = h.mean(-1, keepdims=True)
        var = ((h - mu) ** 2).mean(-1, keepdims=True)
        return (h - mu) / jnp.sqrt(var + _LN_EPS) * g + b

    def lrelu(h):
        return jnp.where(h >= 0, h, _LEAKY_SLOPE * h)

    h = ln(x @ p["w1"] + p["b1"], p["gamma1"], p["beta1"])
    h = lrelu(h)
    h = ln(h @ p["w2"] + p["b2"], p["gamma2"], p["beta2"])
    return lrelu(h + x)


if __name__ == "__main__":
    # N = 2*9 = 18 rows: deliberately NOT a tile multiple, to exercise the
    # pad-free ragged last block.  F = 128 keeps the output lane-dense.
    B, S, F = 2, 9, 128
    key = jax.random.PRNGKey(0)
    kx, kp = jax.random.split(key)
    x = jax.random.normal(kx, (B, S, F), jnp.float32)
    params = init_params(kp, F)

    out = jax.block_until_ready(residual_block(x, params))

    ref = _reference(x, params)
    assert out.shape == x.shape
    # bf16 MXU operands (LN renormalizes after each matmul) -> small deviation
    # from the pure-f32 reference; tolerance sized for that, still catches any
    # real bug (wrong weights / LN / residual would be O(1) off).
    max_err = float(jnp.max(jnp.abs(out - ref)))
    assert jnp.allclose(out, ref, atol=5e-2, rtol=5e-2), f"mismatch vs reference: {max_err}"

    print("KERNEL_OK")
</pallas_src>

<mosaic_0001>
module attributes {stable_mosaic.version = 11 : i64} {
  func.func @_residual_block_kernel(%arg0: i32, %arg1: memref<16x128xf32, #tpu.memory_space<vmem>>, %arg2: memref<128x128xf32, #tpu.memory_space<vmem>>, %arg3: memref<128x128xf32, #tpu.memory_space<vmem>>, %arg4: memref<6x128xf32, #tpu.memory_space<vmem>>, %arg5: memref<16x128xf32, #tpu.memory_space<vmem>>) attributes {dimension_semantics = [#tpu.dimension_semantics<parallel>], iteration_bounds = array<i64: 2>, scalar_prefetch = 0 : i64, scratch_operands = 0 : i64, tpu.core_type = #tpu.core_type<tc>, window_params = [{transform_indices = @transform_0, window_bounds = array<i64: 16, 128>}, {pipeline_mode = #tpu.pipeline_mode<synchronous>, transform_indices = @transform_1, window_bounds = array<i64: 128, 128>}, {pipeline_mode = #tpu.pipeline_mode<synchronous>, transform_indices = @transform_2, window_bounds = array<i64: 128, 128>}, {pipeline_mode = #tpu.pipeline_mode<synchronous>, transform_indices = @transform_3, window_bounds = array<i64: 6, 128>}, {transform_indices = @transform_4, window_bounds = array<i64: 16, 128>}]} {
    %c0 = arith.constant 0 : index
    %c0_0 = arith.constant 0 : index
    %0 = vector.load %arg1[%c0, %c0_0] : memref<16x128xf32, #tpu.memory_space<vmem>>, vector<16x128xf32>
    %c0_1 = arith.constant 0 : index
    %c0_2 = arith.constant 0 : index
    %1 = vector.load %arg4[%c0_1, %c0_2] : memref<6x128xf32, #tpu.memory_space<vmem>>, vector<1x128xf32>
    %c1 = arith.constant 1 : index
    %c0_3 = arith.constant 0 : index
    %2 = vector.load %arg4[%c1, %c0_3] : memref<6x128xf32, #tpu.memory_space<vmem>>, vector<1x128xf32>
    %c2 = arith.constant 2 : index
    %c0_4 = arith.constant 0 : index
    %3 = vector.load %arg4[%c2, %c0_4] : memref<6x128xf32, #tpu.memory_space<vmem>>, vector<1x128xf32>
    %c3 = arith.constant 3 : index
    %c0_5 = arith.constant 0 : index
    %4 = vector.load %arg4[%c3, %c0_5] : memref<6x128xf32, #tpu.memory_space<vmem>>, vector<1x128xf32>
    %c4 = arith.constant 4 : index
    %c0_6 = arith.constant 0 : index
    %5 = vector.load %arg4[%c4, %c0_6] : memref<6x128xf32, #tpu.memory_space<vmem>>, vector<1x128xf32>
    %c5 = arith.constant 5 : index
    %c0_7 = arith.constant 0 : index
    %6 = vector.load %arg4[%c5, %c0_7] : memref<6x128xf32, #tpu.memory_space<vmem>>, vector<1x128xf32>
    %7 = arith.truncf %0 : vector<16x128xf32> to vector<16x128xbf16>
    %c0_8 = arith.constant 0 : index
    %c0_9 = arith.constant 0 : index
    %8 = vector.load %arg2[%c0_8, %c0_9] : memref<128x128xf32, #tpu.memory_space<vmem>>, vector<128x128xf32>
    %9 = arith.truncf %8 : vector<128x128xf32> to vector<128x128xbf16>
    %cst = arith.constant dense<0.000000e+00> : vector<16x128xf32>
    %10 = tpu.matmul %7, %9, %cst {dimension_numbers = #tpu.dot_dimension_numbers<[1], [0], [0], [1], [0, 0, 1, 1], [], []>} : vector<16x128xbf16>, vector<128x128xbf16>, vector<16x128xf32> -> vector<16x128xf32>
    %11 = vector.broadcast %1 : vector<1x128xf32> to vector<16x128xf32>
    %12 = arith.addf %10, %11 : vector<16x128xf32>
    %cst_10 = arith.constant dense<0.000000e+00> : vector<16xf32>
    %13 = vector.multi_reduction <add>, %12, %cst_10 [1] : vector<16x128xf32> to vector<16xf32>
    %14 = vector.shape_cast %13 : vector<16xf32> to vector<16x1xf32>
    %cst_11 = arith.constant 1.280000e+02 : f32
    %15 = vector.broadcast %cst_11 : f32 to vector<16x1xf32>
    %16 = arith.divf %14, %15 : vector<16x1xf32>
    %17 = arith.mulf %12, %12 : vector<16x128xf32>
    %cst_12 = arith.constant dense<0.000000e+00> : vector<16xf32>
    %18 = vector.multi_reduction <add>, %17, %cst_12 [1] : vector<16x128xf32> to vector<16xf32>
    %19 = vector.shape_cast %18 : vector<16xf32> to vector<16x1xf32>
    %cst_13 = arith.constant 1.280000e+02 : f32
    %20 = vector.broadcast %cst_13 : f32 to vector<16x1xf32>
    %21 = arith.divf %19, %20 : vector<16x1xf32>
    %22 = arith.mulf %16, %16 : vector<16x1xf32>
    %23 = arith.subf %21, %22 : vector<16x1xf32>
    %cst_14 = arith.constant 0.000000e+00 : f32
    %24 = vector.broadcast %cst_14 : f32 to vector<16x1xf32>
    %25 = arith.maximumf %23, %24 : vector<16x1xf32>
    %26 = vector.broadcast %16 : vector<16x1xf32> to vector<16x128xf32>
    %27 = arith.subf %12, %26 : vector<16x128xf32>
    %cst_15 = arith.constant 9.99999974E-6 : f32
    %28 = vector.broadcast %cst_15 : f32 to vector<16x1xf32>
    %29 = arith.addf %25, %28 : vector<16x1xf32>
    %30 = math.rsqrt %29 : vector<16x1xf32>
    %31 = vector.broadcast %30 : vector<16x1xf32> to vector<16x128xf32>
    %32 = arith.mulf %27, %31 : vector<16x128xf32>
    %33 = vector.broadcast %2 : vector<1x128xf32> to vector<16x128xf32>
    %34 = arith.mulf %32, %33 : vector<16x128xf32>
    %35 = vector.broadcast %3 : vector<1x128xf32> to vector<16x128xf32>
    %36 = arith.addf %34, %35 : vector<16x128xf32>
    %cst_16 = arith.constant 2.000000e-01 : f32
    %37 = vector.broadcast %cst_16 : f32 to vector<16x128xf32>
    %38 = arith.mulf %37, %36 : vector<16x128xf32>
    %39 = arith.maximumf %36, %38 : vector<16x128xf32>
    %40 = arith.truncf %39 : vector<16x128xf32> to vector<16x128xbf16>
    %c0_17 = arith.constant 0 : index
    %c0_18 = arith.constant 0 : index
    %41 = vector.load %arg3[%c0_17, %c0_18] : memref<128x128xf32, #tpu.memory_space<vmem>>, vector<128x128xf32>
    %42 = arith.truncf %41 : vector<128x128xf32> to vector<128x128xbf16>
    %cst_19 = arith.constant dense<0.000000e+00> : vector<16x128xf32>
    %43 = tpu.matmul %40, %42, %cst_19 {dimension_numbers = #tpu.dot_dimension_numbers<[1], [0], [0], [1], [0, 0, 1, 1], [], []>} : vector<16x128xbf16>, vector<128x128xbf16>, vector<16x128xf32> -> vector<16x128xf32>
    %44 = vector.broadcast %4 : vector<1x128xf32> to vector<16x128xf32>
    %45 = arith.addf %43, %44 : vector<16x128xf32>
    %cst_20 = arith.constant dense<0.000000e+00> : vector<16xf32>
    %46 = vector.multi_reduction <add>, %45, %cst_20 [1] : vector<16x128xf32> to vector<16xf32>
    %47 = vector.shape_cast %46 : vector<16xf32> to vector<16x1xf32>
    %cst_21 = arith.constant 1.280000e+02 : f32
    %48 = vector.broadcast %cst_21 : f32 to vector<16x1xf32>
    %49 = arith.divf %47, %48 : vector<16x1xf32>
    %50 = arith.mulf %45, %45 : vector<16x128xf32>
    %cst_22 = arith.constant dense<0.000000e+00> : vector<16xf32>
    %51 = vector.multi_reduction <add>, %50, %cst_22 [1] : vector<16x128xf32> to vector<16xf32>
    %52 = vector.shape_cast %51 : vector<16xf32> to vector<16x1xf32>
    %cst_23 = arith.constant 1.280000e+02 : f32
    %53 = vector.broadcast %cst_23 : f32 to vector<16x1xf32>
    %54 = arith.divf %52, %53 : vector<16x1xf32>
    %55 = arith.mulf %49, %49 : vector<16x1xf32>
    %56 = arith.subf %54, %55 : vector<16x1xf32>
    %cst_24 = arith.constant 0.000000e+00 : f32
    %57 = vector.broadcast %cst_24 : f32 to vector<16x1xf32>
    %58 = arith.maximumf %56, %57 : vector<16x1xf32>
    %59 = vector.broadcast %49 : vector<16x1xf32> to vector<16x128xf32>
    %60 = arith.subf %45, %59 : vector<16x128xf32>
    %cst_25 = arith.constant 9.99999974E-6 : f32
    %61 = vector.broadcast %cst_25 : f32 to vector<16x1xf32>
    %62 = arith.addf %58, %61 : vector<16x1xf32>
    %63 = math.rsqrt %62 : vector<16x1xf32>
    %64 = vector.broadcast %63 : vector<16x1xf32> to vector<16x128xf32>
    %65 = arith.mulf %60, %64 : vector<16x128xf32>
    %66 = vector.broadcast %5 : vector<1x128xf32> to vector<16x128xf32>
    %67 = arith.mulf %65, %66 : vector<16x128xf32>
    %68 = vector.broadcast %6 : vector<1x128xf32> to vector<16x128xf32>
    %69 = arith.addf %67, %68 : vector<16x128xf32>
    %70 = arith.addf %69, %0 : vector<16x128xf32>
    %cst_26 = arith.constant 2.000000e-01 : f32
    %71 = vector.broadcast %cst_26 : f32 to vector<16x128xf32>
    %72 = arith.mulf %71, %70 : vector<16x128xf32>
    %73 = arith.maximumf %70, %72 : vector<16x128xf32>
    %c0_27 = arith.constant 0 : index
    %c0_28 = arith.constant 0 : index
    %74 = vector.load %arg5[%c0_27, %c0_28] : memref<16x128xf32, #tpu.memory_space<vmem>>, vector<16x128xf32>
    tpu.vector_store %arg5[%c0_27, %c0_28], %73 {strides = array<i32>} : memref<16x128xf32, #tpu.memory_space<vmem>>, vector<16x128xf32>,
    return
  }
  func.func @transform_0(%arg0: i32) -> (i32, i32) {
    %c0_i32 = arith.constant 0 : i32
    %c0_i32_0 = arith.constant 0 : i32
    return %arg0, %c0_i32 : i32, i32
  }
  func.func @transform_1(%arg0: i32) -> (i32, i32) {
    %c0_i32 = arith.constant 0 : i32
    %c0_i32_0 = arith.constant 0 : i32
    %c0_i32_1 = arith.constant 0 : i32
    return %c0_i32, %c0_i32_0 : i32, i32
  }
  func.func @transform_2(%arg0: i32) -> (i32, i32) {
    %c0_i32 = arith.constant 0 : i32
    %c0_i32_0 = arith.constant 0 : i32
    %c0_i32_1 = arith.constant 0 : i32
    return %c0_i32, %c0_i32_0 : i32, i32
  }
  func.func @transform_3(%arg0: i32) -> (i32, i32) {
    %c0_i32 = arith.constant 0 : i32
    %c0_i32_0 = arith.constant 0 : i32
    %c0_i32_1 = arith.constant 0 : i32
    return %c0_i32, %c0_i32_0 : i32, i32
  }
  func.func @transform_4(%arg0: i32) -> (i32, i32) {
    %c0_i32 = arith.constant 0 : i32
    %c0_i32_0 = arith.constant 0 : i32
    return %arg0, %c0_i32 : i32, i32
  }
}

</mosaic_0001>

<bundles_post_ra>
// kernel: residual_block.1
= control target key start
LH: loop header
LB: loop body
LE: loop exit
PB: predicated region body
PF: predicated region fallthrough
CT: control target
= control target key end

     0   :  { %9 = vsyncpa [#allocation3], 0  ;;  %s1207_s0 = inlined_call_operand.vmem [shape: f32[18,128], index: 0, kind: input, shape index: {}]   ;;  %s1208_s1 = inlined_call_operand.hbm [shape: f32[128,128], index: 1, kind: input, shape index: {}]   ;;  %s1209_s2 = inlined_call_operand.hbm [shape: f32[128,128], index: 2, kind: input, shape index: {}]   ;;  %s1210_s3 = inlined_call_operand.vmem [shape: f32[6,128], index: 3, kind: input, shape index: {}]   ;;  %s1211_s4 = inlined_call_operand.vmem [shape: f32[18,128], index: 4, kind: output, shape index: {}]  }
   0x1   :  { %10 = vsyncpa [#allocation5], 0  ;;  %s1051_s15 = smov 0   ;;  %s1053_s16 = smov 0  }
   0x2   :  { %s1055_s17 = smov 0  }
   0x3 LB: > { %s1064_s18 = sadd.s32 4294967295, %s987_s17   ;;  %s1066_s19 = sadd.s32 1, %s987_s17   ;;  %s987_s17 = sphi %s1055_s17, %s1216_s17   ;;  %s983_s16 = sphi %s1053_s16, %s1215_s16   ;;  %s979_s15 = sphi %s1051_s15, %s1214_s15  }
   0x4   : > { %s109_s20 = ssub.s32 %s987_s17, %s1066_s19  ;;  %s112_s21 = sadd.s32 1, %s983_s16 }
   0x5   : > { %p110_p0 = scmp.eq.s32.totalorder %s109_s20, 0  ;;  %p122_p1 = scmp.ne.s32.totalorder %s983_s16, %s979_s15 }
   0x6   : > { %p123_p2 = scmp.eq.s32.totalorder %s1064_s18, 1  ;;  %p707_p3 = scmp.ge.s32.totalorder %s987_s17, 1 }
   0x7   : > { %s1074_s22 = scalar_select %p110_p0, %s983_s16, %s112_s21  }
   0x8   : > { %p1076_p4 = por %p123_p2, %p122_p1  ;;  %p136_p5 = scmp.lt.s32.totalorder %s987_s17, 3 }
   0x9   : > { %p752_p6 = scmp.eq.s32.totalorder %s1064_s18, 0  ;;  %s147_s27 = sshll.u32 %s1208_s1, 4  ;;  %s148_s27 = int_to_ptr.hbm [resolvable:$true] %s147_s27 }
   0xa   : > { %p1081_p7 = pnand %p707_p3, %p136_p5  ;;  %s1021_s28 = smov [#allocation2]  }
   0xb   : > { %s149_s29 = sshll.u32 %s1021_s28, 4  ;;  %s161_s6 = sshll.u32 %s1209_s2, 4  ;;  %s150_s29 = int_to_ptr.vmem [resolvable:$true] %s149_s29  ;;  %s162_s6 = int_to_ptr.hbm [resolvable:$true] %s161_s6 }
   0xc   : > { %p745_p8 = pneg %p1081_p7  ;;  %s1022_s7 = smov 128  }
   0xd   : > { %s1023_s8 = smov 8   ;;  %s1024_s9 = smov [#allocation4]  }
   0xe   : > { %p746_p9 = pnand %p752_p6, %p745_p8  ;;  %s163_s10 = sshll.u32 %s1024_s9, 4  ;;  %s164_s10 = int_to_ptr.vmem [resolvable:$true] %s163_s10 }
   0xf   : > { %199 = sbr.rel (%p1081_p7) target bundleno = 681 (0x2a9), region = 36 }
  0x10   : > { %748 = dma.hbm_to_vmem [thread:$0]  (!%p746_p9), %s148_s27, 2048, %s150_s29, [#allocation3], %s1022_s7, %s1022_s7, %s1023_s8  }
  0x11   : > { %751 = dma.hbm_to_vmem [thread:$0]  (!%p746_p9), %s162_s6, 2048, %s164_s10, [#allocation5], %s1022_s7, %s1022_s7, %s1023_s8  }
  0x14   : > { %970 = dma.done.wait (%p752_p6), [#allocation3], 2048  }
  0x15   : > { %972 = vsyncadd (%p752_p6), [#allocation3], 4294965248 }
  0x16   : > { %974 = dma.done.wait (%p752_p6), [#allocation5], 2048  }
  0x17   : > { %976 = vsyncadd (%p752_p6), [#allocation5], 4294965248  ;;  %v276_v0 = vld [vmem:[#allocation2 + $0x70] sm:$0xff]  ;;  %v277_v1 = vld [vmem:[#allocation2 + $0x78] sm:$0xff]  ;;  %s1106_s11 = sshll.u32 %s1064_s18, 1  ;;  %v1025_v34 = vmov 128.0  }
  0x18   : > { %v274_v2 = vld [vmem:[#allocation2 + $0x60] sm:$0xff]  ;;  %v285_v3 = vpack.c.bf16 %v277_v1, %v276_v0  ;;  %v275_v4 = vld [vmem:[#allocation2 + $0x68] sm:$0xff]  ;;  %v272_v6 = vld [vmem:[#allocation2 + $0x50] sm:$0xff]  ;;  %p239_p10 = scmp.lt.s32.totalorder %s1106_s11, 2  ;;  %855 = vrcp.f32 %v1025_v34  ;;  %s231_s9 = sand.u32 1, %s979_s15  }
  0x19   : > { %v284_v5 = vpack.c.bf16 %v275_v4, %v274_v2  ;;  %v273_v7 = vld [vmem:[#allocation2 + $0x58] sm:$0xff]  ;;  %v270_v9 = vld [vmem:[#allocation2 + $0x40] sm:$0xff]  ;;  %v271_v10 = vld [vmem:[#allocation2 + $0x48] sm:$0xff]  ;;  %s714_s10 = sshll.u32 %s231_s9, 4  ;;  %s472_s15 = ssub.s32 (%p1076_p4), 3, %s1106_s11 }
  0x1a   : > { %287 = vmatpush.bf16.msra.mxu0 %v285_v3  ;;  %v283_v8 = vpack.c.bf16 %v273_v7, %v272_v6  ;;  %v282_v11 = vpack.c.bf16 %v271_v10, %v270_v9  ;;  %v268_v12 = vld [vmem:[#allocation2 + $0x30] sm:$0xff]  ;;  %v269_v13 = vld [vmem:[#allocation2 + $0x38] sm:$0xff]  ;;  %v266_v15 = vld [vmem:[#allocation2 + $0x20] sm:$0xff]  ;;  %s240_s12 = scalar_select %p239_p10, %s1106_s11, 2 }
  0x1b   : > { %v281_v14 = vpack.c.bf16 %v269_v13, %v268_v12  ;;  %v267_v16 = vld [vmem:[#allocation2 + $0x28] sm:$0xff]  ;;  %v264_v18 = vld [vmem:[#allocation2 + $0x10] sm:$0xff]  ;;  %v265_v19 = vld [vmem:[#allocation2 + $0x18] sm:$0xff]  ;;  %p473_p11 = scmp.lt.s32.totalorder (%p1076_p4), %s472_s15, 2 }
  0x1c   : > { %v280_v17 = vpack.c.bf16 %v267_v16, %v266_v15  ;;  %s716_s13 = sshll.u32 %s240_s12, 3  ;;  %v279_v20 = vpack.c.bf16 %v265_v19, %v264_v18  ;;  %v262_v21 = vld [vmem:[#allocation2] sm:$0xff]  ;;  %v263_v22 = vld [vmem:[#allocation2 + $0x8] sm:$0xff]  ;;  %v379_v37 = vld [vmem:[#allocation4 + $0x70] sm:$0xff]  ;;  %s1161_s12 = scalar_lea.vmem [#allocation6], %s714_s10  }
  0x1d   : > { %s242_s20 = scalar_lea.vmem %s1207_s0, %s716_s13  ;;  %v278_v23 = vpack.c.bf16 %v263_v22, %v262_v21  ;;  %v849_v27 = vld [vmem:[%s1210_s3] ss:$0 sm:$0xff]  ;;  %v380_v38 = vld [vmem:[#allocation4 + $0x78] sm:$0xff]  ;;  %v378_v42 = vld [vmem:[#allocation4 + $0x68] sm:$0xff]  ;;  %s734_s13 = sshll.u32 (%p1076_p4), %s1064_s18, 4 }
  0x1e   : > { %288 = vmatpush.bf16.msra.mxu0 %v284_v5  ;;  %v1113_v24 = vld [vmem:[%s242_s20] sm:$0xff]  ;;  %v1115_v25 = vld [vmem:[%s242_s20 + $0x8] sm:$0xff]  ;;  %v856_v35 = vpop.eup %855  ;;  %v388_v39 = vpack.c.bf16 %v380_v38, %v379_v37  ;;  %v375_v45 = vld [vmem:[#allocation4 + $0x50] sm:$0xff]  ;;  %s1173_s20 = scalar_lea.vmem (%p1076_p4), %s1211_s4, %s734_s13  }
  0x1f   : > { %v261_v26 = vpack.c.bf16 %v1115_v25, %v1113_v24  ;;  %v306_v36 = vmul.f32 128.0, %v856_v35  ;;  %v377_v41 = vld [vmem:[#allocation4 + $0x60] sm:$0xff]  ;;  %v376_v46 = vld [vmem:[#allocation4 + $0x58] sm:$0xff]  ;;  %vm310_vm0 = vweird.f32 %v856_v35  ;;  %v374_v50 = vld [vmem:[#allocation4 + $0x48] sm:$0xff] }
  0x20   : > { %390 = vmatpush.bf16.msra.mxu1 %v388_v39  ;;  %v387_v43 = vpack.c.bf16 %v378_v42, %v377_v41  ;;  %v386_v47 = vpack.c.bf16 %v376_v46, %v375_v45  ;;  %v373_v49 = vld [vmem:[#allocation4 + $0x40] sm:$0xff]  ;;  %v371_v54 = vld [vmem:[#allocation4 + $0x30] sm:$0xff]  ;;  %v372_v55 = vld [vmem:[#allocation4 + $0x38] sm:$0xff] }
  0x21   : > { %v307_v40 = vsub.f32 1.0, %v306_v36  ;;  %v385_v51 = vpack.c.bf16 %v374_v50, %v373_v49  ;;  %v384_v57 = vpack.c.bf16 %v372_v55, %v371_v54  ;;  %v369_v61 = vld [vmem:[#allocation4 + $0x20] sm:$0xff]  ;;  %v370_v62 = vld [vmem:[#allocation4 + $0x28] sm:$0xff]  ;;  %v367_v0 = vld [vmem:[#allocation4 + $0x10] sm:$0xff] }
  0x22   : > { %289 = vmatpush.bf16.msra.mxu0 %v283_v8  ;;  %v383_v63 = vpack.c.bf16 %v370_v62, %v369_v61  ;;  %v368_v1 = vld [vmem:[#allocation4 + $0x18] sm:$0xff]  ;;  %v365_v6 = vld [vmem:[#allocation4] sm:$0xff]  ;;  %v366_v7 = vld [vmem:[#allocation4 + $0x8] sm:$0xff] }
  0x23   : > { %v308_v44 = vmul.f32 %v856_v35, %v307_v40  ;;  %v382_v4 = vpack.c.bf16 %v368_v1, %v367_v0  ;;  %v381_v12 = vpack.c.bf16 %v366_v7, %v365_v6  ;;  %v851_v37 = vld [vmem:[%s1210_s3 + $0x2] ss:$0 sm:$0xff]  ;;  %v852_v49 = vld [vmem:[%s1210_s3 + $0x3] ss:$0 sm:$0xff] }
  0x24   : > { %391 = vmatpush.bf16.msra.mxu1 %v387_v43 }
  0x25   : > { %v309_v48 = vadd.f32 %v856_v35, %v308_v44 }
  0x26   : > { %290 = vmatpush.bf16.msra.mxu0 %v282_v11 }
  0x27   : > { %v1132_v52 = vsel %vm310_vm0, %v856_v35, %v309_v48 }
  0x28   : > { %392 = vmatpush.bf16.msra.mxu1 %v386_v47 }
  0x2a   : > { %291 = vmatpush.bf16.msra.mxu0 %v281_v14 }
  0x2c   : > { %393 = vmatpush.bf16.msra.mxu1 %v385_v51 }
  0x2e   : > { %292 = vmatpush.bf16.msra.mxu0 %v280_v17 }
  0x30   : > { %394 = vmatpush.bf16.msra.mxu1 %v384_v57 }
  0x32   : > { %293 = vmatpush.bf16.msra.mxu0 %v279_v20 }
  0x34   : > { %395 = vmatpush.bf16.msra.mxu1 %v383_v63 }
  0x36   : > { %294 = vmatpush.bf16.msra.mxu0 %v278_v23 }
  0x38   : > { %396 = vmatpush.bf16.msra.mxu1 %v382_v4 }
  0x39   : > { %295 = vmatmul.bf16.vlgmr.msra.gmra.mxu0 %v261_v26 }
  0x3c   : > { %397 = vmatpush.bf16.msra.mxu1 %v381_v12 }
  0xb6   : > { %v296_v28 = vpop.f32.mrf.mxu0 }
  0xb7   : > { %v1122_v29 = vadd.f32 %v849_v27, %v296_v28 }
  0xb9   : > { %301 = vadd.xlane.f32.xlu0 %v1122_v29  ;;  %v314_v30 = vmul.f32 %v1122_v29, %v1122_v29 }
  0xbb   : > { %316 = vadd.xlane.f32.xlu1 %v314_v30 }
  0xbe   : > { %v298_v31 = vpop.f32.mrf.mxu0 }
  0xbf   : > { %v1127_v32 = vadd.f32 %v849_v27, %v298_v31 }
  0xc1   : > { %303 = vadd.xlane.f32.xlu0 %v1127_v32  ;;  %v315_v33 = vmul.f32 %v1127_v32, %v1127_v32 }
  0xc3   : > { %318 = vadd.xlane.f32.xlu1 %v315_v33  ;;  %v850_v33 = vld [vmem:[%s1210_s3 + $0x1] ss:$0 sm:$0xff] }
 0x12c   : > { %v302_v53 = vpop.xlane.xlu0 %301 }
 0x12d   : > { %v312_v56 = vmul.f32 %v1132_v52, %v302_v53 }
 0x12e   : > { %v317_v58 = vpop.xlane.xlu1 %316 }
 0x12f   : > { %v322_v59 = vmul.f32 %v312_v56, %v312_v56  ;;  %v320_v60 = vmul.f32 %v317_v58, %v1132_v52  ;;  %v328_v27 = vsub.f32 %v1122_v29, %v312_v56 }
 0x131   : > { %v324_v2 = vsub.f32 %v320_v60, %v322_v59 }
 0x133   : > { %v326_v3 = vmax.f32 %v324_v2, 0.0 }
 0x134   : > { %v304_v5 = vpop.xlane.xlu0 %303 }
 0x135   : > { %v330_v8 = vadd.f32 1e-05, %v326_v3  ;;  %v313_v9 = vmul.f32 %v1132_v52, %v304_v5 }
 0x136   : > { %v319_v10 = vpop.xlane.xlu1 %318 }
 0x137   : > { %857 = vrsqrt.f32 %v330_v8  ;;  %v323_v11 = vmul.f32 %v313_v9, %v313_v9  ;;  %v321_v13 = vmul.f32 %v319_v10, %v1132_v52  ;;  %vm338_vm2 = vweird.f32 %v330_v8 }
 0x138   : > { %v329_v39 = vsub.f32 %v1127_v32, %v313_v9 }
 0x139   : > { %v325_v14 = vsub.f32 %v321_v13, %v323_v11 }
 0x13b   : > { %v327_v15 = vmax.f32 %v325_v14, 0.0 }
 0x13d   : > { %v858_v16 = vpop.eup %857  ;;  %v331_v18 = vadd.f32 1e-05, %v327_v15 }
 0x13e   : > { %v333_v17 = vmul.f32 %v858_v16, %v330_v8  ;;  %vm339_vm1 = vweird.f32 %v858_v16 }
 0x13f   : > { %859 = vrsqrt.f32 %v331_v18  ;;  %vm340_vm3 = vmor %vm338_vm2, %vm339_vm1  ;;  %vm348_vm5 = vweird.f32 %v331_v18 }
 0x140   : > { %v334_v19 = vmul.f32 %v858_v16, %v333_v17 }
 0x142   : > { %v335_v20 = vmul.f32 0.5, %v334_v19 }
 0x144   : > { %v336_v21 = vsub.f32 1.5, %v335_v20 }
 0x145   : > { %v860_v22 = vpop.eup %859 }
 0x146   : > { %v337_v23 = vmul.f32 %v858_v16, %v336_v21  ;;  %v343_v26 = vmul.f32 %v860_v22, %v331_v18  ;;  %vm349_vm4 = vweird.f32 %v860_v22  ;;  %v854_v18 = vld [vmem:[%s1210_s3 + $0x5] ss:$0 sm:$0xff] }
 0x147   : > { %vm350_vm6 = vmor %vm348_vm5, %vm349_vm4 }
 0x148   : > { %v341_v28 = vsel %vm340_vm3, %v858_v16, %v337_v23  ;;  %v344_v30 = vmul.f32 %v860_v22, %v343_v26  ;;  %v853_v16 = vld [vmem:[%s1210_s3 + $0x4] ss:$0 sm:$0xff] }
 0x149   : > { %v352_v31 = vmul.f32 %v341_v28, %v328_v27 }
 0x14a   : > { %v345_v34 = vmul.f32 0.5, %v344_v30 }
 0x14b   : > { %v355_v36 = vmul.f32 %v850_v33, %v352_v31 }
 0x14c   : > { %v346_v35 = vsub.f32 1.5, %v345_v34 }
 0x14d   : > { %v358_v41 = vadd.f32 %v851_v37, %v355_v36 }
 0x14e   : > { %v347_v38 = vmul.f32 %v860_v22, %v346_v35 }
 0x14f   : > { %v360_v44 = vmul.f32 0.2, %v358_v41 }
 0x150   : > { %v351_v29 = vsel %vm350_vm6, %v860_v22, %v347_v38 }
 0x151   : > { %v353_v40 = vmul.f32 %v351_v29, %v329_v39  ;;  %v362_v46 = vmax.f32 %v358_v41, %v360_v44 }
 0x153   : > { %v356_v42 = vmul.f32 %v850_v33, %v353_v40 }
 0x155   : > { %v359_v43 = vadd.f32 %v851_v37, %v356_v42 }
 0x157   : > { %v361_v45 = vmul.f32 0.2, %v359_v43 }
 0x159   : > { %v363_v47 = vmax.f32 %v359_v43, %v361_v45 }
 0x15b   : > { %v364_v48 = vpack.c.bf16 %v363_v47, %v362_v46 }
 0x15d   : > { %398 = vmatmul.bf16.vlgmr.msra.gmra.mxu1 %v364_v48 }
 0x1da   : > { %v399_v50 = vpop.f32.mrf.mxu1 }
 0x1db   : > { %v400_v51 = vadd.f32 %v852_v49, %v399_v50 }
 0x1dd   : > { %404 = vadd.xlane.f32.xlu2 %v400_v51  ;;  %v410_v32 = vmul.f32 %v400_v51, %v400_v51 }
 0x1df   : > { %412 = vadd.xlane.f32.xlu0 %v410_v32 }
 0x1e2   : > { %v401_v53 = vpop.f32.mrf.mxu1 }
 0x1e3   : > { %v402_v54 = vadd.f32 %v852_v49, %v401_v53 }
 0x1e5   : > { %406 = vadd.xlane.f32.xlu2 %v402_v54  ;;  %v411_v55 = vmul.f32 %v402_v54, %v402_v54 }
 0x1e7   : > { %414 = vadd.xlane.f32.xlu1 %v411_v55 }
 0x250   : > { %v405_v56 = vpop.xlane.xlu2 %404 }
 0x251   : > { %v408_v57 = vmul.f32 %v405_v56, %v1132_v52 }
 0x252   : > { %v413_v58 = vpop.xlane.xlu0 %412 }
 0x253   : > { %v418_v59 = vmul.f32 %v408_v57, %v408_v57  ;;  %v416_v60 = vmul.f32 %v413_v58, %v1132_v52  ;;  %v424_v15 = vsub.f32 %v400_v51, %v408_v57 }
 0x255   : > { %v420_v61 = vsub.f32 %v416_v60, %v418_v59 }
 0x257   : > { %v422_v62 = vmax.f32 %v420_v61, 0.0 }
 0x258   : > { %v407_v63 = vpop.xlane.xlu2 %406 }
 0x259   : > { %v426_v0 = vadd.f32 1e-05, %v422_v62  ;;  %v409_v1 = vmul.f32 %v407_v63, %v1132_v52 }
 0x25a   : > { %v415_v2 = vpop.xlane.xlu1 %414 }
 0x25b   : > { %861 = vrsqrt.f32 %v426_v0  ;;  %v419_v3 = vmul.f32 %v409_v1, %v409_v1  ;;  %v417_v4 = vmul.f32 %v415_v2, %v1132_v52  ;;  %vm434_vm8 = vweird.f32 %v426_v0 }
 0x25c   : > { %v425_v30 = vsub.f32 %v402_v54, %v409_v1 }
 0x25d   : > { %v421_v5 = vsub.f32 %v417_v4, %v419_v3 }
 0x25f   : > { %v423_v6 = vmax.f32 %v421_v5, 0.0 }
 0x261   : > { %v862_v7 = vpop.eup %861  ;;  %v427_v9 = vadd.f32 1e-05, %v423_v6 }
 0x262   : > { %v429_v8 = vmul.f32 %v862_v7, %v426_v0  ;;  %vm435_vm7 = vweird.f32 %v862_v7 }
 0x263   : > { %863 = vrsqrt.f32 %v427_v9  ;;  %vm436_vm9 = vmor %vm434_vm8, %vm435_vm7  ;;  %vm444_vm11 = vweird.f32 %v427_v9 }
 0x264   : > { %v430_v10 = vmul.f32 %v862_v7, %v429_v8 }
 0x266   : > { %v431_v11 = vmul.f32 0.5, %v430_v10 }
 0x268   : > { %v432_v12 = vsub.f32 1.5, %v431_v11 }
 0x269   : > { %v864_v13 = vpop.eup %863 }
 0x26a   : > { %v433_v14 = vmul.f32 %v862_v7, %v432_v12  ;;  %v439_v52 = vmul.f32 %v864_v13, %v427_v9  ;;  %vm445_vm10 = vweird.f32 %v864_v13 }
 0x26b   : > { %vm446_vm12 = vmor %vm444_vm11, %vm445_vm10 }
 0x26c   : > { %v437_v17 = vsel %vm436_vm9, %v862_v7, %v433_v14  ;;  %v440_v20 = vmul.f32 %v864_v13, %v439_v52 }
 0x26d   : > { %v448_v19 = vmul.f32 %v437_v17, %v424_v15 }
 0x26e   : > { %v441_v22 = vmul.f32 0.5, %v440_v20 }
 0x26f   : > { %v451_v21 = vmul.f32 %v853_v16, %v448_v19 }
 0x270   : > { %v442_v26 = vsub.f32 1.5, %v441_v22 }
 0x271   : > { %v454_v23 = vadd.f32 %v854_v18, %v451_v21 }
 0x272   : > { %v443_v28 = vmul.f32 %v864_v13, %v442_v26 }
 0x273   : > { %v456_v27 = vadd.f32 %v454_v23, %v1113_v24 }
 0x274   : > { %v447_v33 = vsel %vm446_vm12, %v864_v13, %v443_v28 }
 0x275   : > { %v458_v31 = vmul.f32 0.2, %v456_v27  ;;  %v449_v34 = vmul.f32 %v447_v33, %v425_v30 }
 0x277   : > { %v460_v35 = vmax.f32 %v456_v27, %v458_v31  ;;  %v452_v36 = vmul.f32 %v853_v16, %v449_v34 }
 0x279   : > { %462 = vst [vmem:[%s1161_s12] sm:$0xff] %v460_v35  ;;  %v455_v37 = vadd.f32 %v854_v18, %v452_v36 }
 0x27b   : > { %v457_v38 = vadd.f32 %v455_v37, %v1115_v25 }
 0x27d   : > { %v459_v39 = vmul.f32 0.2, %v457_v38  ;;  %470 = sbr.rel (!%p1076_p4) target bundleno = 681 (0x2a9), region = 48 }
 0x27f   : > { %v461_v29 = vmax.f32 %v457_v38, %v459_v39 }
 0x281   : > { %463 = vst [vmem:[%s1161_s12 + $0x8] sm:$0xff] %v461_v29 }
 0x282   : > { %s1218_s15 = smov (!%p473_p11, %s472_s15), 2 }
 0x283   : > { %s719_s21 = sshll.u32 %s1218_s15, 3 }
 0x284   : > { %p722_p12 = scmp.eq.s32.totalorder %s719_s21, 0 }
 0x285   : > { %s1179_s24 = sshrl.u32 (!%p722_p12), %s1218_s15, 1 }
 0x286   : > { %481 = sbr.rel (%p722_p12) target bundleno = 681 (0x2a9), region = 52  ;;  %p723_p13 = scmp.le.s32.totalorder (!%p722_p12), %s1179_s24, 0 }
 0x28b   : > { %644 = sbr.rel (%p723_p13) target bundleno = 664 (0x298), region = 129  ;;  %s989_s18 = smov (!%p723_p13), %s1173_s20  }
 0x28c   : > { %s993_s23 = smov (!%p723_p13), %s1161_s12   ;;  %s997_s11 = smov (!%p723_p13), 0  }
 0x28d   : > { %s1001_s25 = smov (!%p723_p13), 0  }
 0x290 LB: >> { %v546_v24 = vld [vmem:[%s995_s23] sm:$0xff]  ;;  %v548_v25 = vld [vmem:[%s995_s23 + $0x8] sm:$0xff]  ;;  %s550_s26 = sadd.s32 1, %s999_s11  ;;  %s540_s25 = sadd.s32 1, %s1003_s25   ;;  %s1003_s25 = sphi %s1001_s25, %s540_s25   ;;  %s999_s11 = sphi %s997_s11, %s998_s11   ;;  %s995_s23 = sphi %s993_s23, %s555_s23   ;;  %s991_s18 = sphi %s989_s18, %s556_s18  }
 0x291   : >> { %547 = vst [vmem:[%s991_s18] sm:$0xff] %v546_v24  ;;  %p551_p0 = scmp.ge.s32.totalorder %s550_s26, %s1179_s24  ;;  %p539_p1 = scmp.ge.s32.totalorder %s540_s25, %s1179_s24 }
 0x292   : >> { %549 = vst [vmem:[%s991_s18 + $0x8] sm:$0xff] %v548_v25 }
 0x293   : >> { %s1220_s26 = smov (%p551_p0, %s550_s26), 0  ;;  %542 = sbr.rel (!%p539_p1) target bundleno = 656 (0x290), region = 135 }
 0x294   : >> { %s724_s27 = sshll.u32 %s1220_s26, 4  ;;  %s998_s11 = smov %s1220_s26  }
 0x295   : >> { %s555_s23 = scalar_lea.vmem %s1161_s12, %s724_s27 [#allocation6]   ;;  %s556_s18 = scalar_lea.vmem %s1173_s20, %s724_s27  }
 0x298 PF: > { %s1189_s28 = sand.u32 1, %s1218_s15   ;;  %s735_s29 = sshll.u32 %s1179_s24, 4 }
 0x299   : > { %s561_s30 = scalar_lea.vmem %s1161_s12, %s735_s29 [#allocation6]   ;;  %s563_s5 = scalar_lea.vmem %s1173_s20, %s735_s29  }
 0x29a   : > { %p729_p2 = scmp.le.s32.totalorder %s1189_s28, 0 }
 0x29b   : > { %s1005_s6 = smov (!%p729_p2), %s563_s5   ;;  %s1009_s7 = smov (!%p729_p2), %s561_s30  }
 0x29c   : > { %658 = sbr.rel (%p729_p2) target bundleno = 681 (0x2a9), region = 140  ;;  %s1013_s8 = smov (!%p729_p2), 0  }
 0x29d   : > { %s1017_s9 = smov (!%p729_p2), 0  }
 0x2a1 LB: >> { %v573_v40 = vld [vmem:[%s1011_s7] sm:$0xff]  ;;  %s575_s10 = sadd.s32 1, %s1015_s8  ;;  %s567_s9 = sadd.s32 1, %s1019_s9   ;;  %s1019_s9 = sphi %s1017_s9, %s567_s9   ;;  %s1015_s8 = sphi %s1013_s8, %s1014_s8   ;;  %s1011_s7 = sphi %s1009_s7, %s580_s7   ;;  %s1007_s6 = sphi %s1005_s6, %s581_s6  }
 0x2a2   : >> { %574 = vst [vmem:[%s1007_s6] sm:$0xff] %v573_v40  ;;  %p576_p3 = scmp.ge.s32.totalorder %s575_s10, %s1189_s28  ;;  %p566_p4 = scmp.ge.s32.totalorder %s567_s9, %s1189_s28 }
 0x2a4   : >> { %s1222_s10 = smov (%p576_p3, %s575_s10), 0  ;;  %569 = sbr.rel (!%p566_p4) target bundleno = 673 (0x2a1), region = 146 }
 0x2a5   : >> { %s730_s12 = sshll.u32 %s1222_s10, 3  ;;  %s1014_s8 = smov %s1222_s10  }
 0x2a6   : >> { %s580_s7 = scalar_lea.vmem %s561_s30, %s730_s12 [#allocation6]   ;;  %s581_s6 = scalar_lea.vmem %s563_s5, %s730_s12  }
 0x2a9 PF: > { %p13_p5 = scmp.ge.s32.totalorder %s1066_s19, 4   ;;  %s1214_s15 = smov %s983_s16 }
 0x2aa   : > { %s1215_s16 = smov %s1074_s22  ;;  %s1216_s17 = smov %s1066_s19 }
 0x2ab   :  { %15 = sbr.rel (!%p13_p5) target bundleno = 3 (0x3), region = 157 }
 0x2b0   :  { %597 = vsyncpa [#allocation3], 1 }
 0x2b1   :  { %599 = vsyncpa [#allocation3 + $0x1], 1 }
 0x2b2   :  { %600 = vsyncpa [#allocation5], 1 }

</bundles_post_ra>
